<compile_context>
chip_gen: v7x
topology: tpu7x:2x2x1
jax: 0.10.0
libtpu: 0.0.40
codegen_flags: <defaults>
</compile_context>

<pallas_src>
import functools

import jax
import jax.numpy as jnp
from jax.experimental import pallas as pl
from jax.experimental.pallas import tpu as pltpu


def _round_up(x, m):
    return ((x + m - 1) // m) * m


def _cdiv(a, b):
    return (a + b - 1) // b


# ----------------------------------------------------------------------------
# Kernels
# ----------------------------------------------------------------------------
def _trojan_kernel_fused(num_hidden, *refs):
    """One row tile: h = ReLU(h @ Wh[l] + bh[l]) chain, then the fused
    out = h @ [W_feat | W_edge]_pad + b_cat stored as one lane-dense block."""
    if num_hidden > 0:
        x_ref, wh_ref, bh_ref, wc_ref, bc_ref, out_ref = refs
    else:
        x_ref, wc_ref, bc_ref, out_ref = refs

    h = x_ref[...]
    for l in range(num_hidden):  # static unroll; layernum is compile-time
        h = jnp.maximum(
            jnp.dot(h, wh_ref[l], preferred_element_type=jnp.float32) + bh_ref[l],
            0.0,
        )
    out_ref[...] = (
        jnp.dot(h, wc_ref[...], preferred_element_type=jnp.float32) + bc_ref[...]
    )


def _trojan_kernel_split(num_hidden, nfeat, *refs):
    """Same compute, but feat / edge are stored as two lane-aligned outputs.
    Only used when nfeat % 128 == 0 so both stores stay unmasked."""
    if num_hidden > 0:
        x_ref, wh_ref, bh_ref, wc_ref, bc_ref, feat_ref, edge_ref = refs
    else:
        x_ref, wc_ref, bc_ref, feat_ref, edge_ref = refs

    h = x_ref[...]
    for l in range(num_hidden):
        h = jnp.maximum(
            jnp.dot(h, wh_ref[l], preferred_element_type=jnp.float32) + bh_ref[l],
            0.0,
        )
    out = jnp.dot(h, wc_ref[...], preferred_element_type=jnp.float32) + bc_ref[...]
    feat_ref[...] = out[:, :nfeat]      # lane-aligned slice (nfeat % 128 == 0)
    edge_ref[...] = out[:, nfeat:]      # lane-aligned 128-wide edge block


# ----------------------------------------------------------------------------
# Parameters (PyTorch layout) + one-time layout preparation
# ----------------------------------------------------------------------------
def init_params(key, nfeat, nout, layernum=1):
    """Deterministic init in PyTorch Linear layout: W (out, in), b (out,)."""
    if nout < 3:
        nout = 3
    keys = jax.random.split(key, 2 * (layernum - 1) + 4)
    ki = 0
    hidden = []
    for _ in range(layernum - 1):
        w = jax.random.normal(keys[ki], (nfeat, nfeat), jnp.float32) * 0.1
        b = jax.random.normal(keys[ki + 1], (nfeat,), jnp.float32) * 0.1
        ki += 2
        hidden.append((w, b))
    return {
        "hidden": hidden,
        "feat_w": jax.random.normal(keys[ki], (nfeat, nfeat), jnp.float32) * 0.1,
        "feat_b": jax.random.normal(keys[ki + 1], (nfeat,), jnp.float32) * 0.1,
        "edge_w": jax.random.normal(keys[ki + 2], (nout, nfeat), jnp.float32) * 0.1,
        "edge_b": jax.random.normal(keys[ki + 3], (nout,), jnp.float32) * 0.1,
    }


def prepare_params(params):
    """One-time glue (call once, reuse for every forward):
    transpose (out,in)->(in,out), fuse the two heads into one output matrix
    whose column dim is lane-dense; the K dimension stays UNPADDED."""
    nfeat = params["feat_w"].shape[1]
    nout = params["edge_w"].shape[0]
    num_hidden = len(params["hidden"])
    split_heads = (nfeat % 128 == 0)

    if split_heads:
        edge_width = _round_up(nout, 128)
        out_width = nfeat + edge_width
    else:
        edge_width = 0
        out_width = _round_up(nfeat + nout, 128)

    w_cat = jnp.zeros((nfeat, out_width), jnp.float32)
    w_cat = w_cat.at[:, :nfeat].set(params["feat_w"].T)
    w_cat = w_cat.at[:, nfeat:nfeat + nout].set(params["edge_w"].T)
    b_cat = jnp.zeros((1, out_width), jnp.float32)
    b_cat = b_cat.at[0, :nfeat].set(params["feat_b"])
    b_cat = b_cat.at[0, nfeat:nfeat + nout].set(params["edge_b"])

    if num_hidden > 0:
        wh = jnp.stack([w.T for (w, _) in params["hidden"]])            # (L, nf, nf)
        bh = jnp.stack([b[None, :] for (_, b) in params["hidden"]])     # (L, 1, nf)
        prepared = (wh, bh, w_cat, b_cat)
    else:
        prepared = (w_cat, b_cat)

    meta = dict(
        nfeat=nfeat, nout=nout, num_hidden=num_hidden,
        out_width=out_width, edge_width=edge_width, split_heads=split_heads,
    )
    return prepared, meta


# ----------------------------------------------------------------------------
# Generation-aware VMEM policy + row-tile chooser
# ----------------------------------------------------------------------------
_VMEM_POLICY_CACHE = None


def _vmem_policy():
    """(vmem_limit_bytes, tiling_budget_bytes) tuned to the local TPU gen."""
    global _VMEM_POLICY_CACHE
    if _VMEM_POLICY_CACHE is None:
        try:
            cap = int(pltpu.get_tpu_info().vmem_capacity_bytes)
        except Exception:  # noqa: BLE001 - conservative default if query fails
            cap = 64 << 20  # assume v7x-sized VMEM (smallest current target)
        # ~75% of physical, capped at 96 MiB (v5e/v6e) / 48 MiB (v7x).
        limit = max(16 << 20, min(96 << 20, (cap * 3) // 4))
        budget = (limit * 3) // 4  # headroom for Mosaic-internal scratch
        _VMEM_POLICY_CACHE = (int(limit), int(budget))
    return _VMEM_POLICY_CACHE


def _choose_tile_n(n_rows, nfeat, out_width, num_hidden, budget):
    """Largest row tile that (a) keeps a multi-step grid (>= 4 blocks when N
    permits) for DMA/compute overlap + v7x megacore sharding, and (b) fits the
    VMEM budget, counting resident (single-buffered) weights, double-buffered
    x/out tiles and the in-kernel h / pre-store intermediates."""
    bpe = 4  # float32
    resident = bpe * (num_hidden * (nfeat + 1) * nfeat + (nfeat + 1) * out_width)
    per_row = bpe * (
        2 * nfeat        # double-buffered input tile
        + 3 * out_width  # double-buffered output tile + pre-store result
        + 2 * nfeat      # chained h intermediates (ping-pong across layers)
    )
    avail = max(budget - resident, 8 * per_row)
    cap = min(max((avail // per_row) // 8 * 8, 8), 2048)
    # Keep >= 4 grid steps whenever the row count permits.
    target = _round_up(_cdiv(max(n_rows, 1), 4), 8)
    return int(max(min(cap, target), 8))


# ----------------------------------------------------------------------------
# Forward implementations
# ----------------------------------------------------------------------------
@functools.partial(
    jax.jit,
    static_argnames=(
        "nfeat", "nout", "num_hidden", "out_width", "edge_width", "split_heads",
        "tile_n", "vmem_limit", "single_buffer_weights",
    ),
)
def _forward_pallas(
    x, *weights, nfeat, nout, num_hidden, out_width, edge_width, split_heads,
    tile_n, vmem_limit, single_buffer_weights,
):
    n = x.shape[0]
    x = x.astype(jnp.float32)
    grid = (_cdiv(n, tile_n),)

    # Grid-invariant weights: request single buffering (no point double
    # buffering constant blocks); fallback path drops the flag if unsupported.
    wkw = {"pipeline_mode": pl.Buffered(1)} if single_buffer_weights else {}

    row_spec = pl.BlockSpec((tile_n, nfeat), lambda i: (i, 0))
    wc_spec = pl.BlockSpec((nfeat, out_width), lambda i: (0, 0), **wkw)
    bc_spec = pl.BlockSpec((1, out_width), lambda i: (0, 0), **wkw)

    if num_hidden > 0:
        in_specs = [
            row_spec,
            pl.BlockSpec((num_hidden, nfeat, nfeat), lambda i: (0, 0, 0), **wkw),
            pl.BlockSpec((num_hidden, 1, nfeat), lambda i: (0, 0, 0), **wkw),
            wc_spec,
            bc_spec,
        ]
    else:
        in_specs = [row_spec, wc_spec, bc_spec]

    if split_heads:
        kernel = functools.partial(_trojan_kernel_split, num_hidden, nfeat)
        out_shape = (
            jax.ShapeDtypeStruct((n, nfeat), jnp.float32),
            jax.ShapeDtypeStruct((n, edge_width), jnp.float32),
        )
        out_specs = (
            pl.BlockSpec((tile_n, nfeat), lambda i: (i, 0)),
            pl.BlockSpec((tile_n, edge_width), lambda i: (i, 0)),
        )
    else:
        kernel = functools.partial(_trojan_kernel_fused, num_hidden)
        out_shape = jax.ShapeDtypeStruct((n, out_width), jnp.float32)
        out_specs = pl.BlockSpec((tile_n, out_width), lambda i: (i, 0))

    result = pl.pallas_call(
        kernel,
        out_shape=out_shape,
        grid=grid,
        in_specs=in_specs,
        out_specs=out_specs,
        compiler_params=pltpu.CompilerParams(
            dimension_semantics=("parallel",),
            vmem_limit_bytes=vmem_limit,
        ),
    )(x, *weights)

    if split_heads:
        feat, edge_padded = result
        return feat, edge_padded[:, :nout]     # tiny slice; feat needs no copy
    feat = result[:, :nfeat]
    edge = result[:, nfeat:nfeat + nout]
    return feat, edge


@functools.partial(jax.jit, static_argnames=("nfeat", "nout", "num_hidden"))
def _forward_xla(x, *weights, nfeat, nout, num_hidden):
    """Plain XLA path for tiny graphs where pallas_call launch overhead wins."""
    x = x.astype(jnp.float32)
    if num_hidden > 0:
        wh, bh, w_cat, b_cat = weights
        h = x
        for l in range(num_hidden):
            h = jnp.maximum(h @ wh[l] + bh[l], 0.0)
    else:
        w_cat, b_cat = weights
        h = x
    out = h @ w_cat + b_cat
    return out[:, :nfeat], out[:, nfeat:nfeat + nout]


_SINGLE_BUFFER_WEIGHTS_OK = None  # tri-state probe cache: None / True / False


def graph_trojan_net_forward(x, prepared, meta, *, force_pallas=False):
    """GraphTrojanNet forward. `prepared`, `meta` come from prepare_params()."""
    global _SINGLE_BUFFER_WEIGHTS_OK
    n = int(x.shape[0])

    # Review item: tiny shapes -> plain XLA matmuls (no tiling can amortize the
    # fixed pallas_call launch + glue cost at this size).
    if not force_pallas and n <= 512 and meta["nfeat"] <= 128:
        return _forward_xla(
            x, *prepared,
            nfeat=meta["nfeat"], nout=meta["nout"], num_hidden=meta["num_hidden"],
        )

    vmem_limit, vmem_budget = _vmem_policy()
    tile_n = _choose_tile_n(
        n, meta["nfeat"], meta["out_width"], meta["num_hidden"], vmem_budget
    )
    kwargs = dict(
        nfeat=meta["nfeat"], nout=meta["nout"], num_hidden=meta["num_hidden"],
        out_width=meta["out_width"], edge_width=meta["edge_width"],
        split_heads=meta["split_heads"], tile_n=tile_n, vmem_limit=vmem_limit,
    )

    if _SINGLE_BUFFER_WEIGHTS_OK is not False:
        try:
            out = _forward_pallas(x, *prepared, single_buffer_weights=True, **kwargs)
            jax.block_until_ready(out)
            _SINGLE_BUFFER_WEIGHTS_OK = True
            return out
        except Exception:  # noqa: BLE001 - Buffered(1) unsupported -> default bufs
            _SINGLE_BUFFER_WEIGHTS_OK = False
    return _forward_pallas(x, *prepared, single_buffer_weights=False, **kwargs)


# ----------------------------------------------------------------------------
# Pure-JAX reference mirroring the PyTorch module (high-precision matmuls)
# ----------------------------------------------------------------------------
def reference_forward(x, params):
    hp = jax.lax.Precision.HIGHEST
    h = x
    for w, b in params["hidden"]:
        h = jnp.maximum(jnp.dot(h, w.T, precision=hp) + b, 0.0)
    feat = jnp.dot(h, params["feat_w"].T, precision=hp) + params["feat_b"]
    edge = jnp.dot(h, params["edge_w"].T, precision=hp) + params["edge_b"]
    return feat, edge


if __name__ == "__main__":
    key = jax.random.PRNGKey(0)
    # (N, nfeat, nout, layernum) — small shapes. Case 3 exercises a ragged
    # last row tile + nout<3 clamping; case 4 exercises the 128-aligned
    # split-head (two lane-aligned outputs) path.
    cases = [
        (16, 32, 8, 1),
        (16, 32, 8, 2),
        (20, 32, 2, 3),
        (64, 128, 8, 2),
    ]
    # Tolerance allows for MXU low-precision-pass differences between the
    # Pallas matmul path and the HIGHEST-precision XLA reference.
    ATOL = RTOL = 2e-2

    last = None
    for (n, nfeat, nout, layernum) in cases:
        k_x, k_p, key = jax.random.split(key, 3)
        x = jax.random.normal(k_x, (n, nfeat), jnp.float32)
        params = init_params(k_p, nfeat, nout, layernum=layernum)
        prepared, meta = prepare_params(params)  # one-time layout glue

        feat, edge = graph_trojan_net_forward(x, prepared, meta, force_pallas=True)
        jax.block_until_ready((feat, edge))

        ref_feat, ref_edge = reference_forward(x, params)
        nout_eff = max(nout, 3)
        assert feat.shape == (n, nfeat) and edge.shape == (n, nout_eff)
        assert jnp.allclose(feat, ref_feat, atol=ATOL, rtol=RTOL), (n, nfeat, layernum)
        assert jnp.allclose(edge, ref_edge, atol=ATOL, rtol=RTOL), (n, nfeat, layernum)
        last = (x, prepared, meta, ref_feat, ref_edge)

    # Also exercise the tiny-graph XLA dispatch path once (review item 11).
    x, prepared, meta, ref_feat, ref_edge = last
    feat2, edge2 = graph_trojan_net_forward(x, prepared, meta)
    jax.block_until_ready((feat2, edge2))
    assert jnp.allclose(feat2, ref_feat, atol=ATOL, rtol=RTOL)
    assert jnp.allclose(edge2, ref_edge, atol=ATOL, rtol=RTOL)

    print("KERNEL_OK")
</pallas_src>

<mosaic_0001>
module attributes {stable_mosaic.version = 11 : i64} {
  func.func @_trojan_kernel_fused(%arg0: i32, %arg1: memref<8x32xf32, #tpu.memory_space<vmem>>, %arg2: memref<32x128xf32, #tpu.memory_space<vmem>>, %arg3: memref<1x128xf32, #tpu.memory_space<vmem>>, %arg4: memref<8x128xf32, #tpu.memory_space<vmem>>) attributes {dimension_semantics = [#tpu.dimension_semantics<parallel>], iteration_bounds = array<i64: 2>, scalar_prefetch = 0 : i64, scratch_operands = 0 : i64, tpu.core_type = #tpu.core_type<tc>, window_params = [{transform_indices = @transform_0, window_bounds = array<i64: 8, 32>}, {pipeline_mode = #tpu.pipeline_mode<synchronous>, transform_indices = @transform_1, window_bounds = array<i64: 32, 128>}, {pipeline_mode = #tpu.pipeline_mode<synchronous>, transform_indices = @transform_2, window_bounds = array<i64: 1, 128>}, {transform_indices = @transform_3, window_bounds = array<i64: 8, 128>}]} {
    %c0 = arith.constant 0 : index
    %c0_0 = arith.constant 0 : index
    %0 = vector.load %arg1[%c0, %c0_0] : memref<8x32xf32, #tpu.memory_space<vmem>>, vector<8x32xf32>
    %c0_1 = arith.constant 0 : index
    %c0_2 = arith.constant 0 : index
    %1 = vector.load %arg2[%c0_1, %c0_2] : memref<32x128xf32, #tpu.memory_space<vmem>>, vector<32x128xf32>
    %cst = arith.constant dense<0.000000e+00> : vector<8x128xf32>
    %2 = tpu.matmul %0, %1, %cst {dimension_numbers = #tpu.dot_dimension_numbers<[1], [0], [0], [1], [0, 0, 1, 1], [], []>} : vector<8x32xf32>, vector<32x128xf32>, vector<8x128xf32> -> vector<8x128xf32>
    %c0_3 = arith.constant 0 : index
    %c0_4 = arith.constant 0 : index
    %3 = vector.load %arg3[%c0_3, %c0_4] : memref<1x128xf32, #tpu.memory_space<vmem>>, vector<1x128xf32>
    %4 = vector.broadcast %3 : vector<1x128xf32> to vector<8x128xf32>
    %5 = arith.addf %2, %4 : vector<8x128xf32>
    %c0_5 = arith.constant 0 : index
    %c0_6 = arith.constant 0 : index
    %6 = vector.load %arg4[%c0_5, %c0_6] : memref<8x128xf32, #tpu.memory_space<vmem>>, vector<8x128xf32>
    tpu.vector_store %arg4[%c0_5, %c0_6], %5 {strides = array<i32>} : memref<8x128xf32, #tpu.memory_space<vmem>>, vector<8x128xf32>,
    return
  }
  func.func @transform_0(%arg0: i32) -> (i32, i32) {
    %c0_i32 = arith.constant 0 : i32
    %c0_i32_0 = arith.constant 0 : i32
    return %arg0, %c0_i32 : i32, i32
  }
  func.func @transform_1(%arg0: i32) -> (i32, i32) {
    %c0_i32 = arith.constant 0 : i32
    %c0_i32_0 = arith.constant 0 : i32
    %c0_i32_1 = arith.constant 0 : i32
    return %c0_i32, %c0_i32_0 : i32, i32
  }
  func.func @transform_2(%arg0: i32) -> (i32, i32) {
    %c0_i32 = arith.constant 0 : i32
    %c0_i32_0 = arith.constant 0 : i32
    %c0_i32_1 = arith.constant 0 : i32
    return %c0_i32, %c0_i32_0 : i32, i32
  }
  func.func @transform_3(%arg0: i32) -> (i32, i32) {
    %c0_i32 = arith.constant 0 : i32
    %c0_i32_0 = arith.constant 0 : i32
    return %arg0, %c0_i32 : i32, i32
  }
}

module attributes {stable_mosaic.version = 11 : i64} {
  func.func @_trojan_kernel_fused(%arg0: i32, %arg1: memref<8x32xf32, #tpu.memory_space<vmem>>, %arg2: memref<32x128xf32, #tpu.memory_space<vmem>>, %arg3: memref<1x128xf32, #tpu.memory_space<vmem>>, %arg4: memref<8x128xf32, #tpu.memory_space<vmem>>) attributes {dimension_semantics = [#tpu.dimension_semantics<parallel>], iteration_bounds = array<i64: 2>, scalar_prefetch = 0 : i64, scratch_operands = 0 : i64, tpu.core_type = #tpu.core_type<tc>, window_params = [{transform_indices = @transform_0, window_bounds = array<i64: 8, 32>}, {pipeline_mode = #tpu.pipeline_mode<synchronous>, transform_indices = @transform_1, window_bounds = array<i64: 32, 128>}, {pipeline_mode = #tpu.pipeline_mode<synchronous>, transform_indices = @transform_2, window_bounds = array<i64: 1, 128>}, {transform_indices = @transform_3, window_bounds = array<i64: 8, 128>}]} {
    %c0 = arith.constant 0 : index
    %c0_0 = arith.constant 0 : index
    %0 = vector.load %arg1[%c0, %c0_0] : memref<8x32xf32, #tpu.memory_space<vmem>>, vector<8x32xf32>
    %c0_1 = arith.constant 0 : index
    %c0_2 = arith.constant 0 : index
    %1 = vector.load %arg2[%c0_1, %c0_2] : memref<32x128xf32, #tpu.memory_space<vmem>>, vector<32x128xf32>
    %cst = arith.constant dense<0.000000e+00> : vector<8x128xf32>
    %2 = tpu.matmul %0, %1, %cst {dimension_numbers = #tpu.dot_dimension_numbers<[1], [0], [0], [1], [0, 0, 1, 1], [], []>} : vector<8x32xf32>, vector<32x128xf32>, vector<8x128xf32> -> vector<8x128xf32>
    %c0_3 = arith.constant 0 : index
    %c0_4 = arith.constant 0 : index
    %3 = vector.load %arg3[%c0_3, %c0_4] : memref<1x128xf32, #tpu.memory_space<vmem>>, vector<1x128xf32>
    %4 = vector.broadcast %3 : vector<1x128xf32> to vector<8x128xf32>
    %5 = arith.addf %2, %4 : vector<8x128xf32>
    %c0_5 = arith.constant 0 : index
    %c0_6 = arith.constant 0 : index
    %6 = vector.load %arg4[%c0_5, %c0_6] : memref<8x128xf32, #tpu.memory_space<vmem>>, vector<8x128xf32>
    tpu.vector_store %arg4[%c0_5, %c0_6], %5 {strides = array<i32>} : memref<8x128xf32, #tpu.memory_space<vmem>>, vector<8x128xf32>,
    return
  }
  func.func @transform_0(%arg0: i32) -> (i32, i32) {
    %c0_i32 = arith.constant 0 : i32
    %c0_i32_0 = arith.constant 0 : i32
    return %arg0, %c0_i32 : i32, i32
  }
  func.func @transform_1(%arg0: i32) -> (i32, i32) {
    %c0_i32 = arith.constant 0 : i32
    %c0_i32_0 = arith.constant 0 : i32
    %c0_i32_1 = arith.constant 0 : i32
    return %c0_i32, %c0_i32_0 : i32, i32
  }
  func.func @transform_2(%arg0: i32) -> (i32, i32) {
    %c0_i32 = arith.constant 0 : i32
    %c0_i32_0 = arith.constant 0 : i32
    %c0_i32_1 = arith.constant 0 : i32
    return %c0_i32, %c0_i32_0 : i32, i32
  }
  func.func @transform_3(%arg0: i32) -> (i32, i32) {
    %c0_i32 = arith.constant 0 : i32
    %c0_i32_0 = arith.constant 0 : i32
    return %arg0, %c0_i32 : i32, i32
  }
}

</mosaic_0001>

<bundles_post_ra>
// kernel: _forward_pallas.1
= control target key start
LH: loop header
LB: loop body
LE: loop exit
PB: predicated region body
PF: predicated region fallthrough
CT: control target
= control target key end

     0   :  { %8 = vsyncpa [#allocation3], 0  ;;  %s721_s0 = inlined_call_operand.hbm [shape: f32[16,32], index: 0, kind: input, shape index: {}]   ;;  %s722_s1 = inlined_call_operand.hbm [shape: f32[32,128], index: 1, kind: input, shape index: {}]   ;;  %s723_s2 = inlined_call_operand.vmem [shape: f32[1,128], index: 2, kind: input, shape index: {}]   ;;  %s724_s3 = inlined_call_operand.vmem [shape: f32[16,128], index: 3, kind: output, shape index: {}]  }
   0x1   :  { %10 = vsyncpa [#allocation3 + $0x1], 0 }
   0x2   :  { %11 = vsyncpa [#allocation5], 0  ;;  %s579_s12 = smov 0   ;;  %s581_s13 = smov 0  }
   0x3   :  { %s583_s14 = smov 0   ;;  %s585_s15 = smov 0  }
   0x4 LB: > { %s598_s16 = sadd.s32 4294967295, %s550_s15   ;;  %p37_p0 = scmp.ne.s32.totalorder %s542_s13, %s538_s12  ;;  %s550_s15 = sphi %s585_s15, %s739_s15   ;;  %s546_s14 = sphi %s583_s14, %s738_s14   ;;  %s542_s13 = sphi %s581_s13, %s737_s13   ;;  %s538_s12 = sphi %s579_s12, %s736_s12  }
   0x5   : > { %p725_p1 = scmp.eq.s32.totalorder %s598_s16, 0  ;;  %p364_p2 = scmp.ge.s32.totalorder %s550_s15, 1 }
   0x6   : > { %p116_p3 = scmp.lt.s32.totalorder %s550_s15, 3  ;;  %s552_s19 = smov [#allocation4]  }
   0x7   : > { %p606_p4 = por %p725_p1, %p37_p0  ;;  %s128_s20 = sshll.u32 %s552_s19, 4  ;;  %s129_s20 = int_to_ptr.vmem [resolvable:$true] %s128_s20 }
   0x8   : > { %p610_p5 = pnand %p364_p2, %p116_p3  ;;  %s623_s22 = sadd.s32 1, %s550_s15  }
   0x9   : > { %s728_s17 = scalar_select %p606_p4, 1, 0 }
   0xa   : > { %s729_s18 = scalar_select %p610_p5, 1, 0 }
   0xb   : > { %p405_p6 = pneg %p610_p5  ;;  %s24_s23 = sadd.s32 1, %s546_s14 }
   0xc   : > { %s21_s24 = ssub.s32 %s550_s15, %s623_s22  ;;  %s454_s27 = scalar_lea.hbm %s722_s1, 512 }
   0xd   : > { %p618_p7 = pnand %p405_p6, %p725_p1  ;;  %p455_p8 = scmp.ne.s32.totalorder %s722_s1, %s454_s27 }
   0xe   : > { %p461_p12 = scmp.lt.u32.totalorder %s454_s27, %s722_s1 }
   0xf   : > { %p456_p9 = pneg %p618_p7 }
  0x11   : > { %p457_p10 = pnand %p456_p9, %p455_p8 }
  0x13   : > { %p458_p11 = pneg %p457_p10 }
  0x15   : > { %p463_p13 = pnand %p461_p12, %p458_p11 }
  0x17   : > { %466 = shalt.err (!%p463_p13)
}
  0x18   : > { %s467_s5 = scalar_lea.vmem %s129_s20, 512  ;;  %p475_p6 = scmp.lt.s32.totalorder %s129_s20, %s129_s20 }
  0x19   : > { %p468_p0 = scmp.ne.s32.totalorder %s129_s20, %s467_s5  ;;  %p476_p1 = scmp.lt.s32.totalorder %s467_s5, %s467_s5 }
  0x1b   : > { %p470_p2 = pnand %p468_p0, %p456_p9  ;;  %p477_p4 = por %p476_p1, %p475_p6 }
  0x1d   : > { %p471_p3 = pneg %p470_p2 }
  0x1f   : > { %p478_p5 = pnand %p477_p4, %p471_p3 }
  0x21   : > { %481 = shalt.err (!%p478_p5)
}
  0x22   : > { %s553_s6 = smov 128   ;;  %s554_s7 = smov 8  }
  0x23   : > { %408 = dma.hbm_to_vmem [thread:$0]  (!%p618_p7), %s722_s1, 512, %s129_s20, [#allocation5], %s553_s6, %s553_s6, %s554_s7  }
  0x24   : > { %p22_p8 = scmp.eq.s32.totalorder %s21_s24, 0  ;;  %p31_p9 = scmp.ne.s32.totalorder %s546_s14, %s542_s13 }
  0x25   : > { %p32_p1 = scmp.eq.s32.totalorder %s550_s15, 0  ;;  %p414_p4 = scmp.lt.s32.totalorder %s550_s15, 2 }
  0x26   : > { %s649_s10 = scalar_select %p22_p8, %s546_s14, %s24_s23  }
  0x27   : > { %p33_p5 = por %p32_p1, %p31_p9  ;;  %s145_s11 = sand.u32 1, %s546_s14  }
  0x28   : > { %s367_s12 = sshll.u32 %s145_s11, 3  ;;  %s368_s19 = sshll.u32 %s550_s15, 7 }
  0x29   : > { %s656_s27 = scalar_lea.hbm %s721_s0, %s368_s19  ;;  %s149_s20 = scalar_lea.vmem [#allocation2], %s367_s12 }
  0x2a   : > { %s156_s21 = sshll.u32 %s149_s20, 4  ;;  %p660_p7 = pnand %p414_p4, %p33_p5  ;;  %s658_s21 = int_to_ptr.vmem [resolvable:$true] %s156_s21 }
  0x2b   : > { %s146_s15 = scalar_lea.sflag [#allocation3], %s145_s11  ;;  %s482_s24 = scalar_lea.hbm %s656_s27, 128 }
  0x2c   : > { %p483_p10 = scmp.ne.s32.totalorder %s656_s27, %s482_s24  ;;  %p484_p11 = pneg %p660_p7 }
  0x2d   : > { %s487_s30 = scalar_lea.hbm %s721_s0, 256  ;;  %p488_p0 = scmp.lt.u32.totalorder %s656_s27, %s721_s0 }
  0x2e   : > { %p485_p12 = pnand %p484_p11, %p483_p10  ;;  %p489_p2 = scmp.lt.u32.totalorder %s487_s30, %s482_s24 }
  0x2f   : > { %p491_p6 = scmp.lt.u32.totalorder %s482_s24, %s656_s27 }
  0x30   : > { %p486_p13 = pneg %p485_p12  ;;  %p490_p3 = por %p489_p2, %p488_p0 }
  0x32   : > { %p492_p8 = por %p491_p6, %p490_p3 }
  0x34   : > { %p493_p9 = pnand %p492_p8, %p486_p13 }
  0x36   : > { %496 = shalt.err (!%p493_p9)
}
  0x37   : > { %s497_s6 = scalar_lea.vmem %s658_s21, 128  ;;  %s555_s7 = smov [#allocation2]  }
  0x38   : > { %p498_p1 = scmp.ne.s32.totalorder %s658_s21, %s497_s6  ;;  %s502_s8 = sshll.u32 %s555_s7, 4  ;;  %s503_s8 = int_to_ptr.vmem [resolvable:$false] %s502_s8 }
  0x39   : > { %s504_s9 = scalar_lea.vmem %s503_s8, 256  ;;  %p505_p10 = scmp.lt.s32.totalorder %s658_s21, %s503_s8 }
  0x3a   : > { %p500_p4 = pnand %p498_p1, %p484_p11  ;;  %p506_p12 = scmp.lt.s32.totalorder %s504_s9, %s497_s6 }
  0x3c   : > { %p501_p5 = pneg %p500_p4  ;;  %p507_p0 = por %p506_p12, %p505_p10 }
  0x3e   : > { %p508_p2 = pnand %p507_p0, %p501_p5 }
  0x40   : > { %511 = shalt.err (!%p508_p2)
}
  0x41   : > { %412 = dma.hbm_to_vmem [thread:$0]  (!%p660_p7), %s656_s27, 128, %s658_s21, %s146_s15  }
  0x42   : > { %p732_p13 = scmp.ne.s32.totalorder %s729_s18, 0 }
  0x43   : > { %s167_s11 = sand.u32 (!%p732_p13), 1, %s542_s13   ;;  %p733_p11 = scmp.ne.s32.totalorder (!%p732_p13), %s728_s17, 0 }
  0x44   : > { %165 = sbr.rel (%p732_p13) target bundleno = 304 (0x130), region = 32  ;;  %s370_s12 = sshll.u32 (!%p732_p13), %s167_s11, 3 }
  0x45   : > { %s168_s19 = scalar_lea.sflag (!%p732_p13), [#allocation3], %s167_s11  ;;  %s171_s25 = scalar_lea.vmem (!%p732_p13), [#allocation2], %s370_s12 }
  0x4b   : > { %529 = dma.done.wait (%p733_p11), %s168_s19, 128  }
  0x4c   : > { %531 = vsyncadd (%p733_p11), %s168_s19, 4294967168  ;;  %p734_p3 = scmp.eq.s32.totalorder %s598_s16, 0 }
  0x4e   : > { %533 = dma.done.wait (%p734_p3), [#allocation5], 512   ;;  %p735_p6 = pmov %p734_p3 }
  0x4f   : > { %v556_v0 = vmov 0.0|0.0   ;;  %vm557_vm0 = vmmov 0   ;;  %v558_v1 = vmov 0.0   ;;  %v202_v2 = vld [vmem:[#allocation4] sm:$0xff]  ;;  %v203_v3 = vld [vmem:[#allocation4 + $0x8] sm:$0xff]  ;;  %v204_v4 = vld [vmem:[#allocation4 + $0x10] sm:$0xff] }
  0x50   : > { %535 = vsyncadd (%p735_p6), [#allocation5], 4294966784  ;;  %393 = vmatprep.subr.bf16.mxu0 %v556_v0  ;;  %390 = vmatprep.mubr.msk.f32.mxu0 %vm557_vm0, %v558_v1  ;;  %v394_v5 = vpack.c.bf16 %v203_v3, %v202_v2  ;;  %v205_v6 = vld [vmem:[#allocation4 + $0x18] sm:$0xff]  ;;  %vm213_vm1 = vcmask 261120   ;;  %p197_p7 = scmp.lt.s32.totalorder %s598_s16, 1 }
  0x51   : > { %v397_v7 = vpack.c.bf16 %v205_v6, %v204_v4  ;;  %v201_v8 = vld [vmem:[%s171_s25] sm:$0xff] }
  0x52   : > { %395 = vmatpush3.bf16.msra.mxu0 %v394_v5  ;;  %s741_s16 = smov (!%p197_p7, %s598_s16), 1  ;;  %v373_v9 = vld [vmem:[%s723_s2] ss:$0 sm:$0xff] }
  0x53   : > { %396 = vmatprep.subr.bf16.mxu0 %v556_v0  ;;  %s372_s17 = sshll.u32 %s741_s16, 3 }
  0x54   : > { %s200_s21 = scalar_lea.vmem %s724_s3, %s372_s17 }
  0x56   : > { %398 = vmatpush3.bf16.msra.mxu0 %v397_v7 }
  0x59   : > { %391 = vmatmul.mubr.msk.f32.vlgmr.msra.gmra.mrb[0].mxu0 %vm213_vm1, %v201_v8 }
 0x12c   : > { %v283_v10 = vpop.f32.mrb[0].mxu0 }
 0x12d   : > { %v284_v11 = vadd.f32 %v373_v9, %v283_v10  ;;  %v392_v12 = vpop.f32.mrb[1].mxu0 }
 0x12f   : > { %287 = vst [vmem:[%s200_s21] sm:$0xff] %v284_v11 }
 0x130 PF: > { %p14_p8 = scmp.ge.s32.totalorder %s623_s22, 4   ;;  %s736_s12 = smov %s542_s13 }
 0x131   : > { %s737_s13 = smov %s546_s14  ;;  %s738_s14 = smov %s649_s10 }
 0x132   : > { %s739_s15 = smov %s623_s22  ;;  %16 = sbr.rel (!%p14_p8) target bundleno = 4 (0x4), region = 76 }
 0x139   :  { %307 = vsyncpa [#allocation3], 1 }
 0x13a   :  { %309 = vsyncpa [#allocation3 + $0x1], 1 }
 0x13b   :  { %310 = vsyncpa [#allocation5], 1 }

// kernel: _forward_pallas.1
= control target key start
LH: loop header
LB: loop body
LE: loop exit
PB: predicated region body
PF: predicated region fallthrough
CT: control target
= control target key end

     0   :  { %8 = vsyncpa [#allocation3], 0  ;;  %s721_s0 = inlined_call_operand.hbm [shape: f32[16,32], index: 0, kind: input, shape index: {}]   ;;  %s722_s1 = inlined_call_operand.hbm [shape: f32[32,128], index: 1, kind: input, shape index: {}]   ;;  %s723_s2 = inlined_call_operand.vmem [shape: f32[1,128], index: 2, kind: input, shape index: {}]   ;;  %s724_s3 = inlined_call_operand.vmem [shape: f32[16,128], index: 3, kind: output, shape index: {}]  }
   0x1   :  { %10 = vsyncpa [#allocation3 + $0x1], 0 }
   0x2   :  { %11 = vsyncpa [#allocation5], 0  ;;  %s579_s12 = smov 0   ;;  %s581_s13 = smov 0  }
   0x3   :  { %s583_s14 = smov 0   ;;  %s585_s15 = smov 0  }
   0x4 LB: > { %s598_s16 = sadd.s32 4294967295, %s550_s15   ;;  %p37_p0 = scmp.ne.s32.totalorder %s542_s13, %s538_s12  ;;  %s550_s15 = sphi %s585_s15, %s739_s15   ;;  %s546_s14 = sphi %s583_s14, %s738_s14   ;;  %s542_s13 = sphi %s581_s13, %s737_s13   ;;  %s538_s12 = sphi %s579_s12, %s736_s12  }
   0x5   : > { %p725_p1 = scmp.eq.s32.totalorder %s598_s16, 0  ;;  %p364_p2 = scmp.ge.s32.totalorder %s550_s15, 1 }
   0x6   : > { %p116_p3 = scmp.lt.s32.totalorder %s550_s15, 3  ;;  %s552_s19 = smov [#allocation4]  }
   0x7   : > { %p606_p4 = por %p725_p1, %p37_p0  ;;  %s128_s20 = sshll.u32 %s552_s19, 4  ;;  %s129_s20 = int_to_ptr.vmem [resolvable:$true] %s128_s20 }
   0x8   : > { %p610_p5 = pnand %p364_p2, %p116_p3  ;;  %s623_s22 = sadd.s32 1, %s550_s15  }
   0x9   : > { %s728_s17 = scalar_select %p606_p4, 1, 0 }
   0xa   : > { %s729_s18 = scalar_select %p610_p5, 1, 0 }
   0xb   : > { %p405_p6 = pneg %p610_p5  ;;  %s24_s23 = sadd.s32 1, %s546_s14 }
   0xc   : > { %s21_s24 = ssub.s32 %s550_s15, %s623_s22  ;;  %s454_s27 = scalar_lea.hbm %s722_s1, 512 }
   0xd   : > { %p618_p7 = pnand %p405_p6, %p725_p1  ;;  %p455_p8 = scmp.ne.s32.totalorder %s722_s1, %s454_s27 }
   0xe   : > { %p461_p12 = scmp.lt.u32.totalorder %s454_s27, %s722_s1 }
   0xf   : > { %p456_p9 = pneg %p618_p7 }
  0x11   : > { %p457_p10 = pnand %p456_p9, %p455_p8 }
  0x13   : > { %p458_p11 = pneg %p457_p10 }
  0x15   : > { %p463_p13 = pnand %p461_p12, %p458_p11 }
  0x17   : > { %466 = shalt.err (!%p463_p13)
}
  0x18   : > { %s467_s5 = scalar_lea.vmem %s129_s20, 512  ;;  %p475_p6 = scmp.lt.s32.totalorder %s129_s20, %s129_s20 }
  0x19   : > { %p468_p0 = scmp.ne.s32.totalorder %s129_s20, %s467_s5  ;;  %p476_p1 = scmp.lt.s32.totalorder %s467_s5, %s467_s5 }
  0x1b   : > { %p470_p2 = pnand %p468_p0, %p456_p9  ;;  %p477_p4 = por %p476_p1, %p475_p6 }
  0x1d   : > { %p471_p3 = pneg %p470_p2 }
  0x1f   : > { %p478_p5 = pnand %p477_p4, %p471_p3 }
  0x21   : > { %481 = shalt.err (!%p478_p5)
}
  0x22   : > { %s553_s6 = smov 128   ;;  %s554_s7 = smov 8  }
  0x23   : > { %408 = dma.hbm_to_vmem [thread:$0]  (!%p618_p7), %s722_s1, 512, %s129_s20, [#allocation5], %s553_s6, %s553_s6, %s554_s7  }
  0x24   : > { %p22_p8 = scmp.eq.s32.totalorder %s21_s24, 0  ;;  %p31_p9 = scmp.ne.s32.totalorder %s546_s14, %s542_s13 }
  0x25   : > { %p32_p1 = scmp.eq.s32.totalorder %s550_s15, 0  ;;  %p414_p4 = scmp.lt.s32.totalorder %s550_s15, 2 }
  0x26   : > { %s649_s10 = scalar_select %p22_p8, %s546_s14, %s24_s23  }
  0x27   : > { %p33_p5 = por %p32_p1, %p31_p9  ;;  %s145_s11 = sand.u32 1, %s546_s14  }
  0x28   : > { %s367_s12 = sshll.u32 %s145_s11, 3  ;;  %s368_s19 = sshll.u32 %s550_s15, 7 }
  0x29   : > { %s656_s27 = scalar_lea.hbm %s721_s0, %s368_s19  ;;  %s149_s20 = scalar_lea.vmem [#allocation2], %s367_s12 }
  0x2a   : > { %s156_s21 = sshll.u32 %s149_s20, 4  ;;  %p660_p7 = pnand %p414_p4, %p33_p5  ;;  %s658_s21 = int_to_ptr.vmem [resolvable:$true] %s156_s21 }
  0x2b   : > { %s146_s15 = scalar_lea.sflag [#allocation3], %s145_s11  ;;  %s482_s24 = scalar_lea.hbm %s656_s27, 128 }
  0x2c   : > { %p483_p10 = scmp.ne.s32.totalorder %s656_s27, %s482_s24  ;;  %p484_p11 = pneg %p660_p7 }
  0x2d   : > { %s487_s30 = scalar_lea.hbm %s721_s0, 256  ;;  %p488_p0 = scmp.lt.u32.totalorder %s656_s27, %s721_s0 }
  0x2e   : > { %p485_p12 = pnand %p484_p11, %p483_p10  ;;  %p489_p2 = scmp.lt.u32.totalorder %s487_s30, %s482_s24 }
  0x2f   : > { %p491_p6 = scmp.lt.u32.totalorder %s482_s24, %s656_s27 }
  0x30   : > { %p486_p13 = pneg %p485_p12  ;;  %p490_p3 = por %p489_p2, %p488_p0 }
  0x32   : > { %p492_p8 = por %p491_p6, %p490_p3 }
  0x34   : > { %p493_p9 = pnand %p492_p8, %p486_p13 }
  0x36   : > { %496 = shalt.err (!%p493_p9)
}
  0x37   : > { %s497_s6 = scalar_lea.vmem %s658_s21, 128  ;;  %s555_s7 = smov [#allocation2]  }
  0x38   : > { %p498_p1 = scmp.ne.s32.totalorder %s658_s21, %s497_s6  ;;  %s502_s8 = sshll.u32 %s555_s7, 4  ;;  %s503_s8 = int_to_ptr.vmem [resolvable:$false] %s502_s8 }
  0x39   : > { %s504_s9 = scalar_lea.vmem %s503_s8, 256  ;;  %p505_p10 = scmp.lt.s32.totalorder %s658_s21, %s503_s8 }
  0x3a   : > { %p500_p4 = pnand %p498_p1, %p484_p11  ;;  %p506_p12 = scmp.lt.s32.totalorder %s504_s9, %s497_s6 }
  0x3c   : > { %p501_p5 = pneg %p500_p4  ;;  %p507_p0 = por %p506_p12, %p505_p10 }
  0x3e   : > { %p508_p2 = pnand %p507_p0, %p501_p5 }
  0x40   : > { %511 = shalt.err (!%p508_p2)
}
  0x41   : > { %412 = dma.hbm_to_vmem [thread:$0]  (!%p660_p7), %s656_s27, 128, %s658_s21, %s146_s15  }
  0x42   : > { %p732_p13 = scmp.ne.s32.totalorder %s729_s18, 0 }
  0x43   : > { %s167_s11 = sand.u32 (!%p732_p13), 1, %s542_s13   ;;  %p733_p11 = scmp.ne.s32.totalorder (!%p732_p13), %s728_s17, 0 }
  0x44   : > { %165 = sbr.rel (%p732_p13) target bundleno = 304 (0x130), region = 32  ;;  %s370_s12 = sshll.u32 (!%p732_p13), %s167_s11, 3 }
  0x45   : > { %s168_s19 = scalar_lea.sflag (!%p732_p13), [#allocation3], %s167_s11  ;;  %s171_s25 = scalar_lea.vmem (!%p732_p13), [#allocation2], %s370_s12 }
  0x4b   : > { %529 = dma.done.wait (%p733_p11), %s168_s19, 128  }
  0x4c   : > { %531 = vsyncadd (%p733_p11), %s168_s19, 4294967168  ;;  %p734_p3 = scmp.eq.s32.totalorder %s598_s16, 0 }
  0x4e   : > { %533 = dma.done.wait (%p734_p3), [#allocation5], 512   ;;  %p735_p6 = pmov %p734_p3 }
  0x4f   : > { %v556_v0 = vmov 0.0|0.0   ;;  %vm557_vm0 = vmmov 0   ;;  %v558_v1 = vmov 0.0   ;;  %v202_v2 = vld [vmem:[#allocation4] sm:$0xff]  ;;  %v203_v3 = vld [vmem:[#allocation4 + $0x8] sm:$0xff]  ;;  %v204_v4 = vld [vmem:[#allocation4 + $0x10] sm:$0xff] }
  0x50   : > { %535 = vsyncadd (%p735_p6), [#allocation5], 4294966784  ;;  %393 = vmatprep.subr.bf16.mxu0 %v556_v0  ;;  %390 = vmatprep.mubr.msk.f32.mxu0 %vm557_vm0, %v558_v1  ;;  %v394_v5 = vpack.c.bf16 %v203_v3, %v202_v2  ;;  %v205_v6 = vld [vmem:[#allocation4 + $0x18] sm:$0xff]  ;;  %vm213_vm1 = vcmask 261120   ;;  %p197_p7 = scmp.lt.s32.totalorder %s598_s16, 1 }
  0x51   : > { %v397_v7 = vpack.c.bf16 %v205_v6, %v204_v4  ;;  %v201_v8 = vld [vmem:[%s171_s25] sm:$0xff] }
  0x52   : > { %395 = vmatpush3.bf16.msra.mxu0 %v394_v5  ;;  %s741_s16 = smov (!%p197_p7, %s598_s16), 1  ;;  %v373_v9 = vld [vmem:[%s723_s2] ss:$0 sm:$0xff] }
  0x53   : > { %396 = vmatprep.subr.bf16.mxu0 %v556_v0  ;;  %s372_s17 = sshll.u32 %s741_s16, 3 }
  0x54   : > { %s200_s21 = scalar_lea.vmem %s724_s3, %s372_s17 }
  0x56   : > { %398 = vmatpush3.bf16.msra.mxu0 %v397_v7 }
  0x59   : > { %391 = vmatmul.mubr.msk.f32.vlgmr.msra.gmra.mrb[0].mxu0 %vm213_vm1, %v201_v8 }
 0x12c   : > { %v283_v10 = vpop.f32.mrb[0].mxu0 }
 0x12d   : > { %v284_v11 = vadd.f32 %v373_v9, %v283_v10  ;;  %v392_v12 = vpop.f32.mrb[1].mxu0 }
 0x12f   : > { %287 = vst [vmem:[%s200_s21] sm:$0xff] %v284_v11 }
 0x130 PF: > { %p14_p8 = scmp.ge.s32.totalorder %s623_s22, 4   ;;  %s736_s12 = smov %s542_s13 }
 0x131   : > { %s737_s13 = smov %s546_s14  ;;  %s738_s14 = smov %s649_s10 }
 0x132   : > { %s739_s15 = smov %s623_s22  ;;  %16 = sbr.rel (!%p14_p8) target bundleno = 4 (0x4), region = 76 }
 0x139   :  { %307 = vsyncpa [#allocation3], 1 }
 0x13a   :  { %309 = vsyncpa [#allocation3 + $0x1], 1 }
 0x13b   :  { %310 = vsyncpa [#allocation5], 1 }

</bundles_post_ra>
